<compile_context>
chip_gen: v7x
topology: tpu7x:2x2x1
jax: 0.10.0
libtpu: 0.0.40
codegen_flags: <defaults>
</compile_context>

<pallas_src>
import jax
import jax.numpy as jnp
from jax.experimental import pallas as pl
from jax.experimental.pallas import tpu as pltpu

EPS = 1e-5


def _make_resblock_kernel(L, Lp, tile_l, cout, has_downsample):
    """Build the fused kernel. All arguments are static Python ints/bools."""

    def kernel(x_ref,      # (Cin_p, tile_l)   bf16 packed input lane-tile
               wa_ref,     # (M1, 3*Cin_p)     bf16 BN-scaled conv1 [+ 1x1 downsample]
               w2_ref,     # (Cout, 3*Cout)    bf16 BN-scaled conv2
               ta_ref,     # (M1, 1)           f32 folded shifts (conv1 [+ downsample])
               t2_ref,     # (Cout, 1)         f32 folded shift (conv2)
               out_ref):   # (Cout, tile_l)    f32
        # Global lane index of every column in this tile.  Tiles always start at
        # a sequence boundary (tile_l is a multiple of Lp), so `pos` is the
        # position inside the (possibly padded) sequence.  Built once per step.
        j = pl.program_id(0) * tile_l + jax.lax.broadcasted_iota(
            jnp.int32, (1, tile_l), 1)
        pos = j % Lp
        # keep_l zeroes the x[l-1] tap at the left pad; keep_r zeroes the x[l+1]
        # tap at the right pad (pos == L-1) -- this also blocks garbage leaking
        # in from the L..Lp-1 padded region of the intermediate activation.
        keep_l = jnp.where(pos != 0, 1.0, 0.0)        # (1, tile_l) f32
        keep_r = jnp.where(pos != L - 1, 1.0, 0.0)    # (1, tile_l) f32

        def shifted_slab_bf16(a):
            """(C, tile_l) f32 -> (3C, tile_l) bf16 slab [a[l-1]; a[l]; a[l+1]]."""
            a_m1 = pltpu.roll(a, shift=1, axis=1) * keep_l            # a[:, l-1]
            a_p1 = pltpu.roll(a, shift=tile_l - 1, axis=1) * keep_r   # a[:, l+1]
            return jnp.concatenate([a_m1, a, a_p1], axis=0).astype(jnp.bfloat16)

        x = x_ref[...].astype(jnp.float32)                            # (Cin_p, T)

        # ---- conv1 (k=3, pad=1) [+ fused 1x1 downsample]; BN scale pre-folded ----
        a = jnp.dot(wa_ref[...], shifted_slab_bf16(x),
                    preferred_element_type=jnp.float32)               # (M1, T)
        a = a + ta_ref[...]                                           # BN shift
        h = jnp.maximum(a[:cout, :], 0.0)                             # ReLU (f32)
        if has_downsample:
            idn = a[cout:, :]                                         # downsample + BNd
        else:
            # Identity skip straight from the resident x tile (no eye-matmul).
            idn = x[:cout, :]

        # ---- conv2 (k=3, pad=1) + BN2 shift ----
        o = jnp.dot(w2_ref[...], shifted_slab_bf16(h),
                    preferred_element_type=jnp.float32)               # (Cout, T)

        # ---- residual add + final ReLU: wide, lane-dense, unmasked stores ----
        out_ref[...] = jnp.maximum(o + t2_ref[...] + idn, 0.0)

    return kernel


def _pick_seqs_per_tile(N, Lp):
    """Whole sequences per lane tile: aim for >=512 lanes while keeping >=2 grid
    steps (v7x has 2 TensorCores; on v5e/v6e the grid is a serial loop anyway)."""
    divisors = [d for d in range(1, N + 1) if N % d == 0]
    for d in divisors:
        if d * Lp >= 512 and N // d >= 2:
            return d
    two_step = [d for d in divisors if N // d >= 2]
    return two_step[-1] if two_step else N


def resnet1d_block_pallas(x_ncl, params):
    """x_ncl: (N, Cin, L) float32, PyTorch Conv1d layout. Returns (N, Cout, L) f32.

    Eval-mode BatchNorm (running stats), encoder mode, k=3, stride=1, pad=1.
    """
    N, Cin, L = x_ncl.shape
    Cout = params["w1"].shape[0]
    f32, bf16 = jnp.float32, jnp.bfloat16

    # Pad L to a multiple of 128 (lane-dense fast path) and Cin to a multiple of
    # 16 (bf16 sublane alignment of the im2col concat boundaries).
    Lp = ((L + 127) // 128) * 128
    Cin_p = ((Cin + 15) // 16) * 16

    def fold(w, bias, gamma, beta, mean, var):
        """Fold BN(conv(x) + bias) into scaled weights + per-channel shift."""
        scale = gamma / jnp.sqrt(var + EPS)                    # (Cout,)
        shift = (bias - mean) * scale + beta                   # (Cout,)
        return (w * scale[:, None, None]).astype(f32), shift.reshape(Cout, 1).astype(f32)

    w1s, t1 = fold(params["w1"], params["b1"], params["g1"], params["be1"],
                   params["m1"], params["v1"])
    w2s, t2 = fold(params["w2"], params["b2"], params["g2"], params["be2"],
                   params["m2"], params["v2"])

    # Tap-major fused weights: W[co, k*Cpad + ci] = w[co, ci, k] (ci zero-padded).
    def tapcat(w, cpad):
        w = jnp.pad(w, ((0, 0), (0, cpad - w.shape[1]), (0, 0)))
        return jnp.transpose(w, (0, 2, 1)).reshape(w.shape[0], 3 * cpad)

    w1cat = tapcat(w1s, Cin_p)                                 # (Cout, 3*Cin_p)
    w2cat = tapcat(w2s, Cout)                                  # (Cout, 3*Cout)

    has_downsample = "wd" in params
    if has_downsample:
        wds, td = fold(params["wd"], params["bd"], params["gd"], params["bed"],
                       params["md"], params["vd"])
        wd2 = jnp.pad(wds[:, :, 0], ((0, 0), (0, Cin_p - Cin)))        # (Cout, Cin_p)
        zd = jnp.zeros((Cout, Cin_p), f32)
        wd_row = jnp.concatenate([zd, wd2, zd], axis=1)                # center tap only
        wa = jnp.concatenate([w1cat, wd_row], axis=0)                  # (2*Cout, 3*Cin_p)
        ta = jnp.concatenate([t1, td], axis=0)                         # (2*Cout, 1)
    else:
        # Identity skip (requires Cin == Cout): no stacked row, no extra MACs.
        wa, ta = w1cat, t1

    wa = wa.astype(bf16)
    w2cat = w2cat.astype(bf16)

    # Pack the batch onto the lane axis: (N, Cin, L) -> (Cin_p, N*Lp), bf16.
    xp = jnp.pad(x_ncl, ((0, 0), (0, Cin_p - Cin), (0, Lp - L)))
    x_packed = jnp.transpose(xp, (1, 0, 2)).reshape(Cin_p, N * Lp).astype(bf16)

    seqs = _pick_seqs_per_tile(N, Lp)
    tile_l = seqs * Lp
    num_tiles = (N * Lp) // tile_l

    kernel = _make_resblock_kernel(L, Lp, tile_l, Cout, has_downsample)
    const = lambda shape: pl.BlockSpec(shape, lambda t: (0, 0))        # VMEM-resident

    out_packed = pl.pallas_call(
        kernel,
        out_shape=jax.ShapeDtypeStruct((Cout, N * Lp), f32),
        grid_spec=pltpu.PrefetchScalarGridSpec(
            num_scalar_prefetch=0,
            grid=(num_tiles,),
            in_specs=[
                pl.BlockSpec((Cin_p, tile_l), lambda t: (0, t)),       # x lane tile
                const(wa.shape),                                       # fused conv1[+ds]
                const(w2cat.shape),                                    # conv2
                const(ta.shape),                                       # shifts 1[+ds]
                const(t2.shape),                                       # shift 2
            ],
            out_specs=pl.BlockSpec((Cout, tile_l), lambda t: (0, t)),
        ),
        compiler_params=pltpu.CompilerParams(
            dimension_semantics=("parallel",)),
    )(x_packed, wa, w2cat, ta, t2)

    # Unpack: (Cout, N*Lp) -> (N, Cout, L).
    return jnp.transpose(out_packed.reshape(Cout, N, Lp), (1, 0, 2))[:, :, :L]


def ref_forward(x_ncl, p):
    """Pure-JAX reference mirroring the PyTorch forward (eval-mode BN, f32)."""
    hi = jax.lax.Precision.HIGHEST

    def conv1d(x, w, b, pad):
        N, C, L = x.shape
        O, _, K = w.shape
        xpd = jnp.pad(x, ((0, 0), (0, 0), (pad, pad)))
        Lo = L + 2 * pad - K + 1
        out = jnp.zeros((N, O, Lo), jnp.float32)
        for k in range(K):
            out = out + jnp.einsum("ncl,oc->nol", xpd[:, :, k:k + Lo], w[:, :, k],
                                   precision=hi)
        return out + b[None, :, None]

    def bn(x, g, be, m, v):
        return (x - m[None, :, None]) / jnp.sqrt(v[None, :, None] + EPS) \
            * g[None, :, None] + be[None, :, None]

    h = jnp.maximum(bn(conv1d(x_ncl, p["w1"], p["b1"], 1),
                       p["g1"], p["be1"], p["m1"], p["v1"]), 0.0)
    o = bn(conv1d(h, p["w2"], p["b2"], 1),
           p["g2"], p["be2"], p["m2"], p["v2"])
    idn = bn(conv1d(x_ncl, p["wd"], p["bd"], 0),
             p["gd"], p["bed"], p["md"], p["vd"])
    return jnp.maximum(o + idn, 0.0)


if __name__ == "__main__":
    # N=8, L=128 -> two 512-lane tiles (>=2 parallel grid steps for v7x's 2 TCs).
    # Cin=8 exercises the Cin->16 alignment padding; Cin != Cout exercises the
    # fused downsample branch.
    N, Cin, Cout, L = 8, 8, 16, 128
    key = jax.random.PRNGKey(0)
    ks = jax.random.split(key, 20)

    def norm(k, shape):
        return 0.1 * jax.random.normal(k, shape, jnp.float32)

    params = {
        # conv1 + BN1
        "w1": norm(ks[0], (Cout, Cin, 3)), "b1": norm(ks[1], (Cout,)),
        "g1": 1.0 + norm(ks[2], (Cout,)), "be1": norm(ks[3], (Cout,)),
        "m1": norm(ks[4], (Cout,)), "v1": 1.0 + 0.1 * jax.random.uniform(ks[5], (Cout,)),
        # conv2 + BN2
        "w2": norm(ks[6], (Cout, Cout, 3)), "b2": norm(ks[7], (Cout,)),
        "g2": 1.0 + norm(ks[8], (Cout,)), "be2": norm(ks[9], (Cout,)),
        "m2": norm(ks[10], (Cout,)), "v2": 1.0 + 0.1 * jax.random.uniform(ks[11], (Cout,)),
        # downsample 1x1 conv + BNd (present because Cin != Cout)
        "wd": norm(ks[12], (Cout, Cin, 1)), "bd": norm(ks[13], (Cout,)),
        "gd": 1.0 + norm(ks[14], (Cout,)), "bed": norm(ks[15], (Cout,)),
        "md": norm(ks[16], (Cout,)), "vd": 1.0 + 0.1 * jax.random.uniform(ks[17], (Cout,)),
    }

    x = jax.random.normal(ks[18], (N, Cin, L), jnp.float32)

    out = jax.block_until_ready(resnet1d_block_pallas(x, params))
    ref = ref_forward(x, params)

    assert out.shape == (N, Cout, L), out.shape
    # bf16 matmul operands (f32 accumulation) vs. the pure-f32 reference ->
    # loosened tolerance, as anticipated by the perf review.
    if not jnp.allclose(out, ref, atol=3e-2, rtol=3e-2):
        max_err = float(jnp.max(jnp.abs(out - ref)))
        raise AssertionError(f"Pallas kernel mismatch vs reference, max_err={max_err}")

    print("KERNEL_OK")
</pallas_src>

<mosaic_0001>
module attributes {stable_mosaic.version = 11 : i64} {
  func.func @kernel(%arg0: i32, %arg1: memref<16x512xbf16, #tpu.memory_space<vmem>>, %arg2: memref<32x48xbf16, #tpu.memory_space<vmem>>, %arg3: memref<16x48xbf16, #tpu.memory_space<vmem>>, %arg4: memref<32x1xf32, #tpu.memory_space<vmem>>, %arg5: memref<16x1xf32, #tpu.memory_space<vmem>>, %arg6: memref<16x512xf32, #tpu.memory_space<vmem>>) attributes {dimension_semantics = [#tpu.dimension_semantics<parallel>], iteration_bounds = array<i64: 2>, scalar_prefetch = 0 : i64, scratch_operands = 0 : i64, tpu.core_type = #tpu.core_type<tc>, window_params = [{transform_indices = @transform_0, window_bounds = array<i64: 16, 512>}, {pipeline_mode = #tpu.pipeline_mode<synchronous>, transform_indices = @transform_1, window_bounds = array<i64: 32, 48>}, {pipeline_mode = #tpu.pipeline_mode<synchronous>, transform_indices = @transform_2, window_bounds = array<i64: 16, 48>}, {pipeline_mode = #tpu.pipeline_mode<synchronous>, transform_indices = @transform_3, window_bounds = array<i64: 32, 1>}, {pipeline_mode = #tpu.pipeline_mode<synchronous>, transform_indices = @transform_4, window_bounds = array<i64: 16, 1>}, {transform_indices = @transform_5, window_bounds = array<i64: 16, 512>}]} {
    %c512_i32 = arith.constant 512 : i32
    %0 = arith.muli %arg0, %c512_i32 : i32
    %1 = tpu.iota {dimensions = array<i32: 1>} : vector<1x512xi32>
    %2 = vector.broadcast %0 : i32 to vector<1x512xi32>
    %3 = arith.addi %2, %1 : vector<1x512xi32>
    %c128_i32 = arith.constant 128 : i32
    %c0_i32 = arith.constant 0 : i32
    %4 = arith.cmpi eq, %c128_i32, %c0_i32 : i32
    %c1_i32 = arith.constant 1 : i32
    %5 = arith.select %4, %c1_i32, %c128_i32 : i32
    %6 = vector.broadcast %5 : i32 to vector<1x512xi32>
    %7 = arith.remsi %3, %6 : vector<1x512xi32>
    %c0_i32_0 = arith.constant 0 : i32
    %8 = vector.broadcast %c0_i32_0 : i32 to vector<1x512xi32>
    %9 = arith.cmpi ne, %7, %8 : vector<1x512xi32>
    %c0_i32_1 = arith.constant 0 : i32
    %10 = vector.broadcast %c0_i32_1 : i32 to vector<1x512xi32>
    %11 = arith.cmpi slt, %7, %10 : vector<1x512xi32>
    %c0_i32_2 = arith.constant 0 : i32
    %12 = arith.cmpi slt, %5, %c0_i32_2 : i32
    %13 = vector.broadcast %12 : i1 to vector<1x512xi1>
    %14 = vector.broadcast %13 : vector<1x512xi1> to vector<1x512xi1>
    %15 = arith.xori %11, %14 : vector<1x512xi1>
    %16 = arith.andi %15, %9 : vector<1x512xi1>
    %17 = vector.broadcast %5 : i32 to vector<1x512xi32>
    %18 = arith.addi %7, %17 : vector<1x512xi32>
    %19 = arith.select %16, %18, %7 : vector<1x512xi1>, vector<1x512xi32>
    %c0_i32_3 = arith.constant 0 : i32
    %20 = vector.broadcast %c0_i32_3 : i32 to vector<1x512xi32>
    %21 = arith.cmpi ne, %19, %20 : vector<1x512xi32>
    %cst = arith.constant 1.000000e+00 : f32
    %cst_4 = arith.constant 0.000000e+00 : f32
    %22 = vector.broadcast %cst : f32 to vector<1x512xf32>
    %23 = vector.broadcast %cst_4 : f32 to vector<1x512xf32>
    %24 = arith.select %21, %22, %23 : vector<1x512xi1>, vector<1x512xf32>
    %c127_i32 = arith.constant 127 : i32
    %25 = vector.broadcast %c127_i32 : i32 to vector<1x512xi32>
    %26 = arith.cmpi ne, %19, %25 : vector<1x512xi32>
    %cst_5 = arith.constant 1.000000e+00 : f32
    %cst_6 = arith.constant 0.000000e+00 : f32
    %27 = vector.broadcast %cst_5 : f32 to vector<1x512xf32>
    %28 = vector.broadcast %cst_6 : f32 to vector<1x512xf32>
    %29 = arith.select %26, %27, %28 : vector<1x512xi1>, vector<1x512xf32>
    %c0 = arith.constant 0 : index
    %c0_7 = arith.constant 0 : index
    %30 = vector.load %arg1[%c0, %c0_7] : memref<16x512xbf16, #tpu.memory_space<vmem>>, vector<16x512xbf16>
    %31 = arith.extf %30 : vector<16x512xbf16> to vector<16x512xf32>
    %c0_8 = arith.constant 0 : index
    %c0_9 = arith.constant 0 : index
    %32 = vector.load %arg2[%c0_8, %c0_9] : memref<32x48xbf16, #tpu.memory_space<vmem>>, vector<32x48xbf16>
    %c1_i32_10 = arith.constant 1 : i32
    %33 = tpu.dynamic_rotate %31 by %c1_i32_10 dim 1 : vector<16x512xf32>, i32 -> vector<16x512xf32>
    %34 = vector.broadcast %24 : vector<1x512xf32> to vector<16x512xf32>
    %35 = arith.mulf %33, %34 : vector<16x512xf32>
    %c511_i32 = arith.constant 511 : i32
    %36 = tpu.dynamic_rotate %31 by %c511_i32 dim 1 : vector<16x512xf32>, i32 -> vector<16x512xf32>
    %37 = vector.broadcast %29 : vector<1x512xf32> to vector<16x512xf32>
    %38 = arith.mulf %36, %37 : vector<16x512xf32>
    %39 = tpu.concatenate %35, %31, %38 in 0 : vector<16x512xf32>, vector<16x512xf32>, vector<16x512xf32> -> vector<48x512xf32>
    %40 = arith.truncf %39 : vector<48x512xf32> to vector<48x512xbf16>
    %cst_11 = arith.constant dense<0.000000e+00> : vector<32x512xf32>
    %41 = tpu.matmul %32, %40, %cst_11 {dimension_numbers = #tpu.dot_dimension_numbers<[1], [0], [0], [1], [0, 0, 1, 1], [], []>} : vector<32x48xbf16>, vector<48x512xbf16>, vector<32x512xf32> -> vector<32x512xf32>
    %c0_12 = arith.constant 0 : index
    %c0_13 = arith.constant 0 : index
    %42 = vector.load %arg4[%c0_12, %c0_13] : memref<32x1xf32, #tpu.memory_space<vmem>>, vector<32x1xf32>
    %43 = vector.broadcast %42 : vector<32x1xf32> to vector<32x512xf32>
    %44 = arith.addf %41, %43 : vector<32x512xf32>
    %45 = vector.extract_strided_slice %44 {offsets = [0, 0], sizes = [16, 512], strides = [1, 1]} : vector<32x512xf32> to vector<16x512xf32>
    %cst_14 = arith.constant 0.000000e+00 : f32
    %46 = vector.broadcast %cst_14 : f32 to vector<16x512xf32>
    %47 = arith.maximumf %45, %46 : vector<16x512xf32>
    %48 = vector.extract_strided_slice %44 {offsets = [16, 0], sizes = [16, 512], strides = [1, 1]} : vector<32x512xf32> to vector<16x512xf32>
    %c0_15 = arith.constant 0 : index
    %c0_16 = arith.constant 0 : index
    %49 = vector.load %arg3[%c0_15, %c0_16] : memref<16x48xbf16, #tpu.memory_space<vmem>>, vector<16x48xbf16>
    %c1_i32_17 = arith.constant 1 : i32
    %50 = tpu.dynamic_rotate %47 by %c1_i32_17 dim 1 : vector<16x512xf32>, i32 -> vector<16x512xf32>
    %51 = vector.broadcast %24 : vector<1x512xf32> to vector<16x512xf32>
    %52 = arith.mulf %50, %51 : vector<16x512xf32>
    %c511_i32_18 = arith.constant 511 : i32
    %53 = tpu.dynamic_rotate %47 by %c511_i32_18 dim 1 : vector<16x512xf32>, i32 -> vector<16x512xf32>
    %54 = vector.broadcast %29 : vector<1x512xf32> to vector<16x512xf32>
    %55 = arith.mulf %53, %54 : vector<16x512xf32>
    %56 = tpu.concatenate %52, %47, %55 in 0 : vector<16x512xf32>, vector<16x512xf32>, vector<16x512xf32> -> vector<48x512xf32>
    %57 = arith.truncf %56 : vector<48x512xf32> to vector<48x512xbf16>
    %cst_19 = arith.constant dense<0.000000e+00> : vector<16x512xf32>
    %58 = tpu.matmul %49, %57, %cst_19 {dimension_numbers = #tpu.dot_dimension_numbers<[1], [0], [0], [1], [0, 0, 1, 1], [], []>} : vector<16x48xbf16>, vector<48x512xbf16>, vector<16x512xf32> -> vector<16x512xf32>
    %c0_20 = arith.constant 0 : index
    %c0_21 = arith.constant 0 : index
    %59 = vector.load %arg5[%c0_20, %c0_21] : memref<16x1xf32, #tpu.memory_space<vmem>>, vector<16x1xf32>
    %60 = vector.broadcast %59 : vector<16x1xf32> to vector<16x512xf32>
    %61 = arith.addf %58, %60 : vector<16x512xf32>
    %62 = arith.addf %61, %48 : vector<16x512xf32>
    %cst_22 = arith.constant 0.000000e+00 : f32
    %63 = vector.broadcast %cst_22 : f32 to vector<16x512xf32>
    %64 = arith.maximumf %62, %63 : vector<16x512xf32>
    %c0_23 = arith.constant 0 : index
    %c0_24 = arith.constant 0 : index
    %65 = vector.load %arg6[%c0_23, %c0_24] : memref<16x512xf32, #tpu.memory_space<vmem>>, vector<16x512xf32>
    tpu.vector_store %arg6[%c0_23, %c0_24], %64 {strides = array<i32>} : memref<16x512xf32, #tpu.memory_space<vmem>>, vector<16x512xf32>,
    return
  }
  func.func @transform_0(%arg0: i32) -> (i32, i32) {
    %c0_i32 = arith.constant 0 : i32
    %c0_i32_0 = arith.constant 0 : i32
    return %c0_i32, %arg0 : i32, i32
  }
  func.func @transform_1(%arg0: i32) -> (i32, i32) {
    %c0_i32 = arith.constant 0 : i32
    %c0_i32_0 = arith.constant 0 : i32
    %c0_i32_1 = arith.constant 0 : i32
    return %c0_i32, %c0_i32_0 : i32, i32
  }
  func.func @transform_2(%arg0: i32) -> (i32, i32) {
    %c0_i32 = arith.constant 0 : i32
    %c0_i32_0 = arith.constant 0 : i32
    %c0_i32_1 = arith.constant 0 : i32
    return %c0_i32, %c0_i32_0 : i32, i32
  }
  func.func @transform_3(%arg0: i32) -> (i32, i32) {
    %c0_i32 = arith.constant 0 : i32
    %c0_i32_0 = arith.constant 0 : i32
    %c0_i32_1 = arith.constant 0 : i32
    return %c0_i32, %c0_i32_0 : i32, i32
  }
  func.func @transform_4(%arg0: i32) -> (i32, i32) {
    %c0_i32 = arith.constant 0 : i32
    %c0_i32_0 = arith.constant 0 : i32
    %c0_i32_1 = arith.constant 0 : i32
    return %c0_i32, %c0_i32_0 : i32, i32
  }
  func.func @transform_5(%arg0: i32) -> (i32, i32) {
    %c0_i32 = arith.constant 0 : i32
    %c0_i32_0 = arith.constant 0 : i32
    return %c0_i32, %arg0 : i32, i32
  }
}

</mosaic_0001>

<bundles_post_ra>
// kernel: tpu_custom_call.1
= control target key start
LH: loop header
LB: loop body
LE: loop exit
PB: predicated region body
PF: predicated region fallthrough
CT: control target
= control target key end

     0   :  { %10 = vsyncpa [#allocation3], 0  ;;  %s1633_s0 = inlined_call_operand.hbm [shape: bf16[16,1024], index: 0, kind: input, shape index: {}]   ;;  %s1634_s1 = inlined_call_operand.vmem [shape: bf16[32,48], index: 1, kind: input, shape index: {}]   ;;  %s1635_s2 = inlined_call_operand.vmem [shape: bf16[16,48], index: 2, kind: input, shape index: {}]   ;;  %s1636_s3 = inlined_call_operand.vmem [shape: f32[32,1], index: 3, kind: input, shape index: {}]   ;;  %s1637_s4 = inlined_call_operand.vmem [shape: f32[16,1], index: 4, kind: input, shape index: {}]   ;;  %s1638_s5 = inlined_call_operand.hbm [shape: f32[16,1024], index: 5, kind: output, shape index: {}]  }
   0x1   :  { %12 = vsyncpa [#allocation3 + $0x1], 0 }
   0x2   :  { %13 = vsyncpa [#allocation4], 0 }
   0x3   :  { %15 = vsyncpa [#allocation4 + $0x1], 0  ;;  %s1168_s18 = smov 0   ;;  %s1170_s19 = smov 0  }
   0x4   :  { %s1172_s20 = smov 0   ;;  %s1174_s21 = smov 0  }
   0x5 LB: > { %s1189_s22 = sadd.s32 4294967295, %s1124_s21   ;;  %s865_s23 = sadd.s32 4294967294, %s1124_s21   ;;  %s1124_s21 = sphi %s1174_s21, %s1652_s21   ;;  %s1120_s20 = sphi %s1172_s20, %s1651_s20   ;;  %s1116_s19 = sphi %s1170_s19, %s1650_s19   ;;  %s1112_s18 = sphi %s1168_s18, %s1649_s18  }
   0x6   : > { %s1193_s24 = sadd.s32 1, %s1124_s21   ;;  %s28_s25 = sadd.s32 1, %s1120_s20 }
   0x7   : > { %s25_s26 = ssub.s32 %s1124_s21, %s1193_s24  ;;  %p35_p0 = scmp.ne.s32.totalorder %s1120_s20, %s1116_s19 }
   0x8   : > { %p26_p1 = scmp.eq.s32.totalorder %s25_s26, 0  ;;  %p36_p2 = scmp.eq.s32.totalorder %s1124_s21, 0 }
   0x9   : > { %p41_p3 = scmp.ne.s32.totalorder %s1116_s19, %s1112_s18  ;;  %p42_p4 = scmp.eq.s32.totalorder %s1189_s22, 0 }
   0xa   : > { %s1205_s27 = scalar_select %p26_p1, %s1120_s20, %s28_s25  }
   0xb   : > { %p1207_p5 = por %p36_p2, %p35_p0  ;;  %p1211_p6 = por %p42_p4, %p41_p3 }
   0xc   : > { %p149_p7 = scmp.eq.s32.totalorder %s1189_s22, 1  ;;  %p155_p8 = scmp.eq.s32.totalorder %s865_s23, 1 }
   0xd   : > { %p935_p10 = scmp.lt.s32.totalorder %s1124_s21, 2  ;;  %s187_s7 = sand.u32 1, %s1120_s20  }
   0xe   : > { %p1218_p11 = por %p149_p7, %p35_p0  ;;  %p1222_p12 = por %p155_p8, %p41_p3 }
   0xf   : > { %s897_s8 = sshll.u32 %s1124_s21, 8  ;;  %s868_s9 = sshll.u32 %s187_s7, 5 }
  0x10   : > { %s1642_s30 = scalar_select %p1218_p11, 1, 0 }
  0x11   : > { %s1643_s6 = scalar_select %p1222_p12, 1, 0 }
  0x12   : > { %s1231_s12 = scalar_lea.hbm %s1633_s0, %s897_s8  ;;  %s191_s13 = scalar_lea.vmem [#allocation2], %s868_s9 }
  0x13   : > { %s198_s14 = sshll.u32 %s191_s13, 4  ;;  %p1235_p13 = pnand %p935_p10, %p1207_p5  ;;  %s1239_s14 = int_to_ptr.vmem [resolvable:$true] %s198_s14 }
  0x14   : > { %s1242_s16 = scalar_lea.sflag [#allocation3], %s187_s7  ;;  %s1028_s17 = scalar_lea.hbm %s1231_s12, 512 }
  0x15   : > { %p1029_p1 = scmp.ne.s32.totalorder %s1231_s12, %s1028_s17  ;;  %p1030_p2 = pneg %p1235_p13 }
  0x16   : > { %s1033_s26 = scalar_lea.hbm %s1633_s0, 1024  ;;  %p1034_p5 = scmp.lt.u32.totalorder %s1231_s12, %s1633_s0 }
  0x17   : > { %p1031_p3 = pnand %p1030_p2, %p1029_p1  ;;  %p1035_p7 = scmp.lt.u32.totalorder %s1033_s26, %s1028_s17 }
  0x18   : > { %p1037_p10 = scmp.lt.u32.totalorder %s1028_s17, %s1231_s12 }
  0x19   : > { %p1032_p4 = pneg %p1031_p3  ;;  %p1036_p8 = por %p1035_p7, %p1034_p5 }
  0x1b   : > { %p1038_p9 = por %p1037_p10, %p1036_p8 }
  0x1d   : > { %p1039_p0 = pnand %p1038_p9, %p1032_p4 }
  0x1f   : > { %1042 = shalt.err (!%p1039_p0)
}
  0x20   : > { %s1043_s7 = scalar_lea.vmem %s1239_s14, 512  ;;  %s1126_s9 = smov [#allocation2]  }
  0x21   : > { %p1044_p1 = scmp.ne.s32.totalorder %s1239_s14, %s1043_s7  ;;  %s1048_s10 = sshll.u32 %s1126_s9, 4  ;;  %s1049_s10 = int_to_ptr.vmem [resolvable:$false] %s1048_s10 }
  0x22   : > { %s1050_s11 = scalar_lea.vmem %s1049_s10, 1024  ;;  %p1051_p11 = scmp.lt.s32.totalorder %s1239_s14, %s1049_s10 }
  0x23   : > { %p1046_p3 = pnand %p1044_p1, %p1030_p2  ;;  %p1052_p5 = scmp.lt.s32.totalorder %s1050_s11, %s1043_s7 }
  0x25   : > { %p1047_p12 = pneg %p1046_p3  ;;  %p1053_p7 = por %p1052_p5, %p1051_p11 }
  0x27   : > { %p1054_p8 = pnand %p1053_p7, %p1047_p12 }
  0x29   : > { %1057 = shalt.err (!%p1054_p8)
}
  0x2a   : > { %s1127_s13 = smov 512   ;;  %s1128_s17 = smov 256  }
  0x2b   : > { %s1129_s23 = smov 16   ;;  %p206_p9 = scmp.lt.s32.totalorder %s1124_s21, 3 }
  0x2c   : > { %930 = dma.hbm_to_vmem [thread:$0]  (!%p1235_p13), %s1231_s12, 512, %s1239_s14, %s1242_s16, %s1127_s13, %s1128_s17, %s1129_s23  }
  0x2d   : > { %p1645_p0 = scmp.ge.s32.totalorder %s1124_s21, 1 }
  0x2f   : > { %p207_p2 = pnand %p1645_p0, %p206_p9 }
  0x30   : > { %s1274_s25 = sand.u32 (!%p207_p2), 1, %s1116_s19  }
  0x31   : > { %210 = sbr.rel (%p207_p2) target bundleno = 807 (0x327), region = 40  ;;  %s872_s26 = sshll.u32 (!%p207_p2), %s1274_s25, 5 }
  0x32   : > { %s213_s28 = scalar_lea.sflag (!%p207_p2), [#allocation3], %s1274_s25  ;;  %s216_s8 = scalar_lea.vmem (!%p207_p2), [#allocation2], %s872_s26 }
  0x38   : > { %1103 = dma.done.wait (%p1211_p6), %s213_s28, 512  }
  0x39   : > { %1105 = vsyncadd (%p1211_p6), %s213_s28, 4294966784  ;;  %v1282_v0 = vld [vmem:[%s216_s8 + $0x8] sm:$0xff]  ;;  %v1284_v1 = vld [vmem:[%s216_s8 + $0x18] sm:$0xff]  ;;  %s1130_s29 = smov 1   ;;  %s1131_s12 = smov 127   ;;  %v1132_v21 = vmov 0   ;;  %v247_v23 = vlaneseq }
  0x3a   : > { %v1286_v2 = vld [vmem:[%s216_s8] sm:$0xff]  ;;  %v327_v3 = vunpack.c.l.bf16 %v1282_v0  ;;  %v331_v4 = vunpack.c.l.bf16 %v1284_v1  ;;  %v1290_v5 = vld [vmem:[%s216_s8 + $0x10] sm:$0xff]  ;;  %v328_v7 = vunpack.c.h.bf16 %v1282_v0  ;;  %v332_v9 = vunpack.c.h.bf16 %v1284_v1  ;;  %v416_v20 = vld [vmem:[%s1636_s3 + $0x8] sm:$0xff]  ;;  %488 = vmatprep.mubr.bf16.mxu0 %v1132_v21  ;;  %541 = vmatprep.mubr.bf16.mxu1 %v1132_v21  ;;  %s874_s9 = sshll.u32 %s1189_s22, 9  ;;  %s873_s10 = sshll.u32 %s1274_s25, 6 }
  0x3b   : > { %v325_v6 = vunpack.c.l.bf16 %v1286_v2  ;;  %v329_v8 = vunpack.c.l.bf16 %v1290_v5  ;;  %v326_v10 = vunpack.c.h.bf16 %v1286_v2  ;;  %v330_v11 = vunpack.c.h.bf16 %v1290_v5  ;;  %v415_v22 = vld [vmem:[%s1636_s3] sm:$0xff]  ;;  %1019 = vset.pattern.permute.xlu0 %v1132_v21  ;;  %1020 = vset.pattern.permute.xlu1 %v1132_v21  ;;  %s1571_s11 = scalar_lea.vmem [#allocation5], %s873_s10  ;;  %s1579_s26 = scalar_lea.hbm %s1638_s5, %s874_s9 }
  0x3c   : > { %v989_v12 = vpack.i.bf16 %v331_v4, %v327_v3  ;;  %v994_v14 = vpack.i.bf16 %v332_v9, %v328_v7  ;;  %v880_v16 = vcombine.high %v1286_v2, %v1290_v5  ;;  %v882_v17 = vcombine.high %v1282_v0, %v1284_v1  ;;  %s792_s13 = sshll.u32 %s1571_s11, 4  ;;  %s779_s22 = scalar_lea.sflag [#allocation4], %s1274_s25  ;;  %s1582_s13 = int_to_ptr.vmem [resolvable:$true] %s792_s13 }
  0x3d   : > { %v979_v13 = vpack.i.bf16 %v329_v8, %v325_v6  ;;  %v984_v15 = vpack.i.bf16 %v330_v11, %v326_v10  ;;  %v879_v18 = vcombine.low %v1286_v2, %v1290_v5  ;;  %v881_v19 = vcombine.low %v1282_v0, %v1284_v1  ;;  %p1646_p11 = scmp.ne.s32.totalorder %s1642_s30, 0  ;;  %s1134_s28 = smov [#allocation5]  }
  0x3e   : > { %990 = vrot.lane.b32.xlu1 %v989_v12, %s1130_s29  ;;  %v1324_v24 = vand.u32 127, %v247_v23  ;;  %v252_v26 = vstv %s874_s9  ;;  %v1133_v63 = vmov 0.0   ;;  %s1058_s9 = scalar_lea.vmem %s1582_s13, 1024  ;;  %s1062_s8 = sshll.u32 %s1134_s28, 4  ;;  %s1063_s8 = int_to_ptr.vmem [resolvable:$false] %s1062_s8 }
  0x3f   : > { %980 = vrot.lane.b32.xlu0 %v979_v13, %s1130_s29  ;;  %p1059_p6 = scmp.ne.s32.totalorder %s1582_s13, %s1058_s9  ;;  %p1065_p4 = scmp.lt.s32.totalorder %s1582_s13, %s1063_s8 }
  0x40   : > { %v251_v25 = vadd.s32 384, %v1324_v24  ;;  %v249_v27 = vadd.s32 128, %v1324_v24  ;;  %v250_v29 = vadd.s32 256, %v1324_v24  ;;  %v253_v31 = vadd.s32 %v252_v26, %v1324_v24 }
  0x41   : > { %p1060_p12 = pnand %p1059_p6, %p1646_p11 }
  0x42   : > { %995 = vrot.lane.b32.xlu1 %v994_v14, %s1130_s29  ;;  %v256_v28 = vadd.s32 %v252_v26, %v251_v25  ;;  %v254_v30 = vadd.s32 %v252_v26, %v249_v27  ;;  %v255_v33 = vadd.s32 %v252_v26, %v250_v29  ;;  %v258_v35 = vsub.s32 0, %v253_v31 }
  0x43   : > { %985 = vrot.lane.b32.xlu0 %v984_v15, %s1130_s29  ;;  %vm257_vm2 = vcmp.lt.s32.totalorder %v253_v31, 0  ;;  %p1061_p13 = pneg %p1060_p12 }
  0x44   : > { %v279_v32 = vsub.s32 0, %v256_v28  ;;  %v265_v34 = vsub.s32 0, %v254_v30  ;;  %v272_v37 = vsub.s32 0, %v255_v33  ;;  %v875_v39 = vmin.u32 %v258_v35, %v253_v31 }
  0x45   : > { %vm278_vm0 = vcmp.lt.s32.totalorder %v256_v28, 0  ;;  %vm264_vm1 = vcmp.lt.s32.totalorder %v254_v30, 0  ;;  %vm271_vm3 = vcmp.lt.s32.totalorder %v255_v33, 0 }
  0x46   : > { %1005 = vrot.lane.b32.xlu1 %v984_v15, %s1131_s12  ;;  %v878_v36 = vmin.u32 %v279_v32, %v256_v28  ;;  %v876_v38 = vmin.u32 %v265_v34, %v254_v30  ;;  %v877_v41 = vmin.u32 %v272_v37, %v255_v33  ;;  %v261_v43 = vand.u32 127, %v875_v39 }
  0x47   : > { %1000 = vrot.lane.b32.xlu0 %v979_v13, %s1131_s12 }
  0x48   : > { %v282_v40 = vand.u32 127, %v878_v36  ;;  %v268_v42 = vand.u32 127, %v876_v38  ;;  %v275_v45 = vand.u32 127, %v877_v41  ;;  %v262_v47 = vsub.s32 0, %v261_v43 }
  0x4a   : > { %1015 = vrot.lane.b32.xlu1 %v994_v14, %s1131_s12  ;;  %v283_v44 = vsub.s32 0, %v282_v40  ;;  %v269_v46 = vsub.s32 0, %v268_v42  ;;  %v276_v49 = vsub.s32 0, %v275_v45  ;;  %v263_v51 = vsel %vm257_vm2, %v262_v47, %v261_v43 }
  0x4b   : > { %1010 = vrot.lane.b32.xlu0 %v989_v12, %s1131_s12  ;;  %vm285_vm8 = vcmp.ne.s32.totalorder %v263_v51, 0  ;;  %vm289_vm9 = vcmp.lt.s32.totalorder %v263_v51, 0  ;;  %v297_v55 = vadd.s32 128, %v263_v51 }
  0x4c   : > { %v284_v48 = vsel %vm278_vm0, %v283_v44, %v282_v40  ;;  %v270_v50 = vsel %vm264_vm1, %v269_v46, %v268_v42  ;;  %v277_v52 = vsel %vm271_vm3, %v276_v49, %v275_v45  ;;  %vm293_vm14 = vmand %vm289_vm9, %vm285_vm8 }
  0x4d   : > { %vm288_vm4 = vcmp.ne.s32.totalorder %v284_v48, 0  ;;  %vm292_vm5 = vcmp.lt.s32.totalorder %v284_v48, 0  ;;  %vm286_vm6 = vcmp.ne.s32.totalorder %v270_v50, 0  ;;  %vm290_vm7 = vcmp.lt.s32.totalorder %v270_v50, 0 }
  0x4e   : > { %426 = vperm.xlu1 %1020, %v416_v20   ;;  %v300_v53 = vadd.s32 128, %v284_v48  ;;  %vm296_vm10 = vmand %vm292_vm5, %vm288_vm4  ;;  %v298_v54 = vadd.s32 128, %v270_v50  ;;  %vm287_vm12 = vcmp.ne.s32.totalorder %v277_v52, 0  ;;  %vm291_vm13 = vcmp.lt.s32.totalorder %v277_v52, 0 }
  0x4f   : > { %421 = vperm.xlu0 %1019, %v415_v22   ;;  %vm294_vm11 = vmand %vm290_vm7, %vm286_vm6  ;;  %v299_v57 = vadd.s32 128, %v277_v52  ;;  %v301_v59 = vsel %vm293_vm14, %v297_v55, %v263_v51  ;;  %vm386_vm4 = vcmp.lt.s32.totalorder %v1324_v24, 127  ;;  %vm353_vm5 = vcmp.lt.s32.totalorder %v1324_v24, 1 }
  0x50   : > { %v304_v56 = vsel %vm296_vm10, %v300_v53, %v284_v48  ;;  %v1333_v58 = vsel %vm294_vm11, %v298_v54, %v270_v50  ;;  %vm295_vm15 = vmand %vm291_vm13, %vm287_vm12  ;;  %vm305_vm3 = vcmp.ne.s32.totalorder %v301_v59, 0  ;;  %vm313_vm7 = vcmp.ne.s32.totalorder %v301_v59, 127 }
  0x51   : > { %vm308_vm0 = vcmp.ne.s32.totalorder %v304_v56, 0  ;;  %vm316_vm1 = vcmp.ne.s32.totalorder %v304_v56, 127  ;;  %vm306_vm2 = vcmp.ne.s32.totalorder %v1333_v58, 0  ;;  %v1336_v61 = vsel %vm295_vm15, %v299_v57, %v277_v52 }
  0x52   : > { %v1339_v3 = vsel %vm308_vm0, 1.0, %v1133_v63  ;;  %v1342_v4 = vsel %vm316_vm1, 1.0, %v1133_v63  ;;  %v1344_v6 = vsel %vm306_vm2, 1.0, %v1133_v63  ;;  %vm314_vm6 = vcmp.ne.s32.totalorder %v1333_v58, 127 }
  0x53   : > { %vm307_vm8 = vcmp.ne.s32.totalorder %v1336_v61, 0  ;;  %v1348_v10 = vsel %vm305_vm3, 1.0, %v1133_v63  ;;  %vm315_vm9 = vcmp.ne.s32.totalorder %v1336_v61, 127  ;;  %v1353_v25 = vsel %vm313_vm7, 1.0, %v1133_v63 }
  0x54   : > { %v1351_v23 = vsel %vm307_vm8, 1.0, %v1133_v63  ;;  %v1385_v57 = vsel %vm314_vm6, 1.0, %v1133_v63  ;;  %vm449_vm10 = vcmask 392192  }
  0xb0   : > { %v991_v60 = vpop.permute.xlu1 %990 }
  0xb1   : > { %v981_v62 = vpop.permute.xlu0 %980  ;;  %v993_v7 = vunpack.i.h.bf16 %v991_v60  ;;  %v992_v8 = vunpack.i.l.bf16 %v991_v60 }
  0xb2   : > { %v983_v11 = vunpack.i.h.bf16 %v981_v62  ;;  %v982_v12 = vunpack.i.l.bf16 %v981_v62 }
  0xb4   : > { %v996_v9 = vpop.permute.xlu1 %995 }
  0xb5   : > { %v998_v13 = vunpack.i.h.bf16 %v996_v9  ;;  %v997_v14 = vunpack.i.l.bf16 %v996_v9  ;;  %v986_v15 = vpop.permute.xlu0 %985 }
  0xb6   : > { %v988_v20 = vunpack.i.h.bf16 %v986_v15  ;;  %v987_v22 = vunpack.i.l.bf16 %v986_v15 }
  0xb7   : > { %v354_v26 = vsel %vm353_vm5, %v992_v8, %v997_v14  ;;  %v355_v27 = vsel %vm353_vm5, %v993_v7, %v998_v13  ;;  %v360_v28 = vsel %vm353_vm5, %v997_v14, %v982_v12  ;;  %v361_v29 = vsel %vm353_vm5, %v998_v13, %v983_v11 }
  0xb8   : > { %v1006_v30 = vpop.permute.xlu1 %1005  ;;  %v365_v31 = vmul.f32 %v354_v26, %v1339_v3  ;;  %v369_v32 = vmul.f32 %v355_v27, %v1339_v3  ;;  %v358_v33 = vsel %vm353_vm5, %v982_v12, %v987_v22  ;;  %v359_v34 = vsel %vm353_vm5, %v983_v11, %v988_v20 }
  0xb9   : > { %v1008_v35 = vunpack.i.h.bf16 %v1006_v30  ;;  %v1007_v36 = vunpack.i.l.bf16 %v1006_v30  ;;  %v1001_v37 = vpop.permute.xlu0 %1000  ;;  %v363_v38 = vmul.f32 %v358_v33, %v1344_v6  ;;  %v367_v39 = vmul.f32 %v359_v34, %v1344_v6  ;;  %v1025_v30 = vld [vmem:[%s1634_s1] sm:$0xff]  }
  0xba   : > { %v1003_v40 = vunpack.i.h.bf16 %v1001_v37  ;;  %v1002_v41 = vunpack.i.l.bf16 %v1001_v37  ;;  %v406_v42 = vpack.c.bf16 %v369_v32, %v365_v31  ;;  %v362_v43 = vmul.f32 %v360_v28, %v1348_v10 }
  0xbb   : > { %v404_v44 = vpack.c.bf16 %v367_v39, %v363_v38  ;;  %v366_v45 = vmul.f32 %v361_v29, %v1348_v10  ;;  %v356_v46 = vsel %vm353_vm5, %v987_v22, %v992_v8  ;;  %v357_v47 = vsel %vm353_vm5, %v988_v20, %v993_v7 }
  0xbc   : > { %v392_v48 = vsel %vm386_vm4, %v1003_v40, %v1008_v35  ;;  %v391_v49 = vsel %vm386_vm4, %v1002_v41, %v1007_v36  ;;  %509 = vmatprep.subr.bf16.mxu1 %v406_v42  ;;  %v1016_v50 = vpop.permute.xlu1 %1015  ;;  %v364_v51 = vmul.f32 %v356_v46, %v1351_v23  ;;  %v368_v52 = vmul.f32 %v357_v47, %v1351_v23 }
  0xbd   : > { %v1018_v53 = vunpack.i.h.bf16 %v1016_v50  ;;  %v1017_v54 = vunpack.i.l.bf16 %v1016_v50  ;;  %v1011_v55 = vpop.permute.xlu0 %1010  ;;  %456 = vmatprep.subr.bf16.mxu0 %v404_v44  ;;  %v403_v56 = vpack.c.bf16 %v366_v45, %v362_v43  ;;  %v1389_v7 = vsel %vm315_vm9, 1.0, %v1133_v63 }
  0xbe   : > { %v1013_v59 = vunpack.i.h.bf16 %v1011_v55  ;;  %v1012_v60 = vunpack.i.l.bf16 %v1011_v55  ;;  %v405_v62 = vpack.c.bf16 %v368_v52, %v364_v51  ;;  %v395_v11 = vmul.f32 %v391_v49, %v1353_v25  ;;  %v1026_v55 = vld [vmem:[%s1634_s1 + $0x8] sm:$0xff]  }
  0xbf   : > { %v393_v8 = vsel %vm386_vm4, %v1017_v54, %v1002_v41  ;;  %v394_v9 = vsel %vm386_vm4, %v1018_v53, %v1003_v40  ;;  %457 = vmatpush1.bf16.msra.mxu0 %v403_v56  ;;  %v399_v58 = vmul.f32 %v392_v48, %v1353_v25  ;;  %v418_v56 = vld [vmem:[%s1636_s3 + $0x18] sm:$0xff] }
  0xc0   : > { %v388_v12 = vsel %vm386_vm4, %v1013_v59, %v1018_v53  ;;  %v390_v13 = vsel %vm386_vm4, %v1008_v35, %v1013_v59  ;;  %v387_v61 = vsel %vm386_vm4, %v1012_v60, %v1017_v54  ;;  %v389_v63 = vsel %vm386_vm4, %v1007_v36, %v1012_v60  ;;  %510 = vmatpush1.bf16.msra.mxu1 %v405_v62  ;;  %v648_v59 = vld [vmem:[%s1637_s4] sm:$0xff]  ;;  %v649_v60 = vld [vmem:[%s1637_s4 + $0x8] sm:$0xff] }
  0xc1   : > { %458 = vmatprep.subr.bf16.mxu0 %v880_v16  ;;  %511 = vmatprep.subr.bf16.mxu1 %v882_v17  ;;  %v396_v14 = vmul.f32 %v389_v63, %v1385_v57  ;;  %v400_v15 = vmul.f32 %v390_v13, %v1385_v57  ;;  %v398_v20 = vmul.f32 %v393_v8, %v1342_v4 }
  0xc2   : > { %v402_v22 = vmul.f32 %v394_v9, %v1342_v4  ;;  %v397_v26 = vmul.f32 %v387_v61, %v1389_v7  ;;  %v401_v27 = vmul.f32 %v388_v12, %v1389_v7  ;;  %v411_v29 = vpack.c.bf16 %v399_v58, %v395_v11 }
  0xc3   : > { %459 = vmatpush1.bf16.msra.mxu0 %v879_v18  ;;  %v412_v16 = vpack.c.bf16 %v400_v15, %v396_v14 }
  0xc4   : > { %512 = vmatpush1.bf16.msra.mxu1 %v881_v19  ;;  %v414_v17 = vpack.c.bf16 %v402_v22, %v398_v20  ;;  %v413_v28 = vpack.c.bf16 %v401_v27, %v397_v26 }
  0xc5   : > { %460 = vmatprep.subr.bf16.mxu0 %v412_v16 }
  0xc6   : > { %513 = vmatprep.subr.bf16.mxu1 %v414_v17 }
  0xc7   : > { %461 = vmatpush1.bf16.msra.mxu0 %v411_v29 }
  0xc8   : > { %514 = vmatpush1.bf16.msra.mxu1 %v413_v28 }
  0xca   : > { %885 = vmatmul.mubr.msk.bf16.vlgmr.msra.gmra.mrb[0].mxu0 %vm449_vm10, %v1025_v30 }
  0xcb   : > { %887 = vmatmul.mubr.msk.bf16.vlgmr.msra.gmra.mrb[0].mxu1 %vm449_vm10, %v1025_v30  ;;  %498 = vmatprep.mubr.bf16.mxu0 %v1132_v21 }
  0xcc   : > { %551 = vmatprep.mubr.bf16.mxu1 %v1132_v21 }
  0xcd   : > { %v427_v2 = vpop.permute.xlu1 %426 }
  0xce   : > { %v422_v0 = vpop.permute.xlu0 %421 }
  0xd2   : > { %886 = vmatmul.mubr.msk.bf16.gmra.mrb[4].mxu0 %vm449_vm10, %v1026_v55 }
  0xd3   : > { %888 = vmatmul.mubr.msk.bf16.gmra.mrb[4].mxu1 %vm449_vm10, %v1026_v55  ;;  %700 = vmatprep.mubr.bf16.mxu0 %v1132_v21 }
  0xd4   : > { %743 = vmatprep.mubr.bf16.mxu1 %v1132_v21  ;;  %v417_v21 = vld [vmem:[%s1636_s3 + $0x10] sm:$0xff] }
 0x19d   : > { %v490_v1 = vpop.f32.mrb[0].mxu0 }
 0x19e   : > { %v491_v5 = vadd.f32 %v490_v1, %v422_v0  ;;  %v543_v18 = vpop.f32.mrb[0].mxu1  ;;  %v492_v19 = vpop.f32.mrb[1].mxu0 }
 0x19f   : > { %v544_v31 = vadd.f32 %v543_v18, %v422_v0  ;;  %v493_v32 = vadd.f32 %v492_v19, %v422_v0  ;;  %v545_v33 = vpop.f32.mrb[1].mxu1  ;;  %v494_v34 = vpop.f32.mrb[2].mxu0 }
 0x1a0   : > { %v1430_v35 = vmax.f32 %v491_v5, 0.0  ;;  %v546_v36 = vadd.f32 %v545_v33, %v422_v0  ;;  %v495_v37 = vadd.f32 %v494_v34, %v427_v2  ;;  %v547_v38 = vpop.f32.mrb[2].mxu1  ;;  %v496_v39 = vpop.f32.mrb[3].mxu0 }
 0x1a1   : > { %v1432_v40 = vmax.f32 %v544_v31, 0.0  ;;  %v548_v41 = vadd.f32 %v547_v38, %v427_v2  ;;  %v497_v42 = vadd.f32 %v496_v39, %v427_v2  ;;  %v549_v43 = vpop.f32.mrb[3].mxu1  ;;  %v1440_v47 = vmax.f32 %v493_v32, 0.0 }
 0x1a2   : > { %v1434_v44 = vmax.f32 %v546_v36, 0.0  ;;  %v1436_v45 = vmax.f32 %v495_v37, 0.0  ;;  %v550_v46 = vadd.f32 %v549_v43, %v427_v2  ;;  %572 = vrot.lane.b32.xlu1 %v1430_v35, %s1130_s29 }
 0x1a3   : > { %v1442_v48 = vmax.f32 %v548_v41, 0.0  ;;  %v1444_v49 = vmax.f32 %v497_v42, 0.0 }
 0x1a4   : > { %v640_v50 = vpack.c.bf16 %v1436_v45, %v1430_v35  ;;  %v1448_v51 = vmax.f32 %v550_v46, 0.0  ;;  %574 = vrot.lane.b32.xlu0 %v1436_v45, %s1130_s29 }
 0x1a5   : > { %v642_v52 = vpack.c.bf16 %v1442_v48, %v1432_v40  ;;  %v641_v53 = vpack.c.bf16 %v1444_v49, %v1440_v47 }
 0x1a6   : > { %580 = vrot.lane.b32.xlu1 %v1432_v40, %s1130_s29  ;;  %v643_v54 = vpack.c.bf16 %v1448_v51, %v1434_v44 }
 0x1a8   : > { %582 = vrot.lane.b32.xlu0 %v1442_v48, %s1130_s29 }
 0x1aa   : > { %604 = vrot.lane.b32.xlu1 %v1430_v35, %s1131_s12 }
 0x1ac   : > { %606 = vrot.lane.b32.xlu0 %v1436_v45, %s1131_s12 }
 0x1ae   : > { %612 = vrot.lane.b32.xlu1 %v1432_v40, %s1131_s12 }
 0x1b0   : > { %614 = vrot.lane.b32.xlu0 %v1442_v48, %s1131_s12 }
 0x1b2   : > { %576 = vrot.lane.b32.xlu1 %v1440_v47, %s1130_s29 }
 0x1b4   : > { %578 = vrot.lane.b32.xlu0 %v1444_v49, %s1130_s29 }
 0x1b6   : > { %584 = vrot.lane.b32.xlu1 %v1434_v44, %s1130_s29 }
 0x1b8   : > { %586 = vrot.lane.b32.xlu0 %v1448_v51, %s1130_s29  ;;  %s1064_s29 = scalar_lea.vmem %s1063_s8, 2048 }
 0x1b9   : > { %p1066_p10 = scmp.lt.s32.totalorder %s1064_s29, %s1058_s9 }
 0x1ba   : > { %608 = vrot.lane.b32.xlu1 %v1440_v47, %s1131_s12 }
 0x1bb   : > { %p1067_p1 = por %p1066_p10, %p1065_p4 }
 0x1bc   : > { %610 = vrot.lane.b32.xlu0 %v1444_v49, %s1131_s12 }
 0x1bd   : > { %p1068_p3 = pnand %p1067_p1, %p1061_p13 }
 0x1be   : > { %616 = vrot.lane.b32.xlu1 %v1434_v44, %s1131_s12 }
 0x1c0   : > { %618 = vrot.lane.b32.xlu0 %v1448_v51, %s1131_s12  ;;  %v1027_v51 = vld [vmem:[%s1635_s2] sm:$0xff]  }
 0x1c2   : > { %431 = vperm.xlu1 %1020, %v417_v21  }
 0x1c4   : > { %436 = vperm.xlu0 %1019, %v418_v56  }
 0x1c6   : > { %652 = vperm.xlu1 %1020, %v648_v59  }
 0x1c8   : > { %657 = vperm.xlu0 %1019, %v649_v60  }
 0x214   : > { %v573_v62 = vpop.permute.xlu1 %572 }
 0x216   : > { %v575_v8 = vpop.permute.xlu0 %574 }
 0x218   : > { %v581_v9 = vpop.permute.xlu1 %580 }
 0x21a   : > { %v583_v11 = vpop.permute.xlu0 %582 }
 0x21c   : > { %v605_v58 = vpop.permute.xlu1 %604 }
 0x21e   : > { %v607_v12 = vpop.permute.xlu0 %606 }
 0x220   : > { %v613_v13 = vpop.permute.xlu1 %612 }
 0x222   : > { %v615_v61 = vpop.permute.xlu0 %614 }
 0x224   : > { %v577_v63 = vpop.permute.xlu1 %576 }
 0x225   : > { %v592_v14 = vsel %vm353_vm5, %v573_v62, %v577_v63  ;;  %v590_v29 = vsel %vm353_vm5, %v577_v63, %v581_v9 }
 0x226   : > { %v579_v15 = vpop.permute.xlu0 %578  ;;  %v597_v22 = vmul.f32 %v592_v14, %v1344_v6  ;;  %v598_v33 = vmul.f32 %v590_v29, %v1351_v23 }
 0x227   : > { %v593_v20 = vsel %vm353_vm5, %v575_v8, %v579_v15  ;;  %v591_v26 = vsel %vm353_vm5, %v579_v15, %v583_v11 }
 0x228   : > { %v601_v27 = vmul.f32 %v593_v20, %v1344_v6  ;;  %v585_v16 = vpop.permute.xlu1 %584  ;;  %v602_v1 = vmul.f32 %v591_v26, %v1351_v23 }
 0x229   : > { %v588_v17 = vsel %vm353_vm5, %v581_v9, %v585_v16  ;;  %v594_v28 = vsel %vm353_vm5, %v585_v16, %v573_v62 }
 0x22a   : > { %v587_v30 = vpop.permute.xlu0 %586  ;;  %v637_v0 = vpack.c.bf16 %v601_v27, %v597_v22  ;;  %v596_v5 = vmul.f32 %v594_v28, %v1348_v10  ;;  %v599_v18 = vmul.f32 %v588_v17, %v1339_v3  ;;  %v638_v39 = vpack.c.bf16 %v602_v1, %v598_v33 }
 0x22b   : > { %v589_v2 = vsel %vm353_vm5, %v583_v11, %v587_v30  ;;  %v595_v6 = vsel %vm353_vm5, %v587_v30, %v575_v8 }
 0x22c   : > { %v600_v19 = vmul.f32 %v595_v6, %v1348_v10  ;;  %v603_v31 = vmul.f32 %v589_v2, %v1339_v3  ;;  %668 = vmatprep.subr.bf16.mxu0 %v637_v0  ;;  %v609_v32 = vpop.permute.xlu1 %608 }
 0x22d   : > { %v622_v34 = vsel %vm386_vm4, %v609_v32, %v613_v13  ;;  %v624_v3 = vsel %vm386_vm4, %v605_v58, %v609_v32 }
 0x22e   : > { %v636_v36 = vpack.c.bf16 %v600_v19, %v596_v5  ;;  %v611_v37 = vpop.permute.xlu0 %610  ;;  %v639_v38 = vpack.c.bf16 %v603_v31, %v599_v18  ;;  %v629_v10 = vmul.f32 %v622_v34, %v1385_v57  ;;  %v628_v59 = vmul.f32 %v624_v3, %v1353_v25 }
 0x22f   : > { %v623_v41 = vsel %vm386_vm4, %v611_v37, %v615_v61  ;;  %v625_v42 = vsel %vm386_vm4, %v607_v12, %v611_v37 }
 0x230   : > { %v633_v23 = vmul.f32 %v623_v41, %v1385_v57  ;;  %669 = vmatpush1.bf16.msra.mxu0 %v636_v36  ;;  %711 = vmatprep.subr.bf16.mxu1 %v639_v38  ;;  %v617_v43 = vpop.permute.xlu1 %616  ;;  %v632_v21 = vmul.f32 %v625_v42, %v1353_v25 }
 0x231   : > { %v620_v46 = vsel %vm386_vm4, %v613_v13, %v617_v43  ;;  %v626_v55 = vsel %vm386_vm4, %v617_v43, %v605_v58  ;;  %670 = vmatprep.subr.bf16.mxu0 %v641_v53  ;;  %712 = vmatpush1.bf16.msra.mxu1 %v638_v39 }
 0x232   : > { %v619_v56 = vpop.permute.xlu0 %618  ;;  %713 = vmatprep.subr.bf16.mxu1 %v643_v54  ;;  %v645_v57 = vpack.c.bf16 %v633_v23, %v629_v10  ;;  %v630_v47 = vmul.f32 %v620_v46, %v1389_v7  ;;  %v631_v49 = vmul.f32 %v626_v55, %v1342_v4  ;;  %v644_v24 = vpack.c.bf16 %v632_v21, %v628_v59 }
 0x233   : > { %v621_v60 = vsel %vm386_vm4, %v615_v61, %v619_v56  ;;  %v627_v62 = vsel %vm386_vm4, %v619_v56, %v607_v12 }
 0x234   : > { %v634_v53 = vmul.f32 %v621_v60, %v1389_v7  ;;  %v635_v8 = vmul.f32 %v627_v62, %v1342_v4  ;;  %671 = vmatpush1.bf16.msra.mxu0 %v640_v50 }
 0x235   : > { %672 = vmatprep.subr.bf16.mxu0 %v645_v57  ;;  %714 = vmatpush1.bf16.msra.mxu1 %v642_v52 }
 0x236   : > { %v646_v25 = vpack.c.bf16 %v634_v53, %v630_v47  ;;  %v647_v44 = vpack.c.bf16 %v635_v8, %v631_v49 }
 0x238   : > { %673 = vmatpush1.bf16.msra.mxu0 %v644_v24  ;;  %715 = vmatprep.subr.bf16.mxu1 %v647_v44 }
 0x239   : > { %716 = vmatpush1.bf16.msra.mxu1 %v646_v25 }
 0x23b   : > { %890 = vmatmul.mubr.msk.bf16.vlgmr.msra.gmra.mrb[4].mxu0 %vm449_vm10, %v1027_v51 }
 0x23c   : > { %891 = vmatmul.mubr.msk.bf16.vlgmr.msra.gmra.mrb[4].mxu1 %vm449_vm10, %v1027_v51 }
 0x241   : > { %v432_v4 = vpop.permute.xlu1 %431 }
 0x243   : > { %v437_v7 = vpop.permute.xlu0 %436 }
 0x245   : > { %v653_v35 = vpop.permute.xlu1 %652 }
 0x246   : > { %v899_v40 = vadd.f32 %v653_v35, %v432_v4 }
 0x247   : > { %v658_v45 = vpop.permute.xlu0 %657 }
 0x248   : > { %v903_v50 = vadd.f32 %v658_v45, %v437_v7 }
 0x30e   : > { %v702_v48 = vpop.f32.mrb[4].mxu0 }
 0x30f   : > { %v900_v52 = vadd.f32 %v899_v40, %v702_v48  ;;  %v704_v54 = vpop.f32.mrb[5].mxu0  ;;  %v745_v9 = vpop.f32.mrb[4].mxu1 }
 0x310   : > { %v902_v11 = vadd.f32 %v899_v40, %v704_v54  ;;  %v908_v58 = vadd.f32 %v899_v40, %v745_v9  ;;  %v706_v12 = vpop.f32.mrb[6].mxu0  ;;  %v747_v13 = vpop.f32.mrb[5].mxu1 }
 0x311   : > { %v762_v61 = vmax.f32 %v900_v52, 0.0  ;;  %v904_v63 = vadd.f32 %v903_v50, %v706_v12  ;;  %v910_v14 = vadd.f32 %v899_v40, %v747_v13  ;;  %v708_v15 = vpop.f32.mrb[7].mxu0  ;;  %v749_v20 = vpop.f32.mrb[6].mxu1 }
 0x312   : > { %v763_v22 = vmax.f32 %v902_v11, 0.0  ;;  %v764_v26 = vmax.f32 %v908_v58, 0.0  ;;  %v906_v27 = vadd.f32 %v903_v50, %v708_v15  ;;  %v912_v16 = vadd.f32 %v903_v50, %v749_v20  ;;  %v751_v17 = vpop.f32.mrb[7].mxu1 }
 0x313   : > { %770 = vst [vmem:[%s1571_s11] sm:$0xff] %v762_v61  ;;  %v766_v28 = vmax.f32 %v904_v63, 0.0  ;;  %v765_v29 = vmax.f32 %v910_v14, 0.0  ;;  %v914_v30 = vadd.f32 %v903_v50, %v751_v17 }
 0x314   : > { %771 = vst [vmem:[%s1571_s11 + $0x8] sm:$0xff] %v763_v22  ;;  %772 = vst [vmem:[%s1571_s11 + $0x10] sm:$0xff] %v764_v26  ;;  %v767_v0 = vmax.f32 %v906_v27, 0.0  ;;  %v768_v1 = vmax.f32 %v912_v16, 0.0 }
 0x315   : > { %774 = vst [vmem:[%s1571_s11 + $0x20] sm:$0xff] %v766_v28  ;;  %773 = vst [vmem:[%s1571_s11 + $0x18] sm:$0xff] %v765_v29  ;;  %v769_v2 = vmax.f32 %v914_v30, 0.0 }
 0x316   : > { %775 = vst [vmem:[%s1571_s11 + $0x28] sm:$0xff] %v767_v0  ;;  %776 = vst [vmem:[%s1571_s11 + $0x30] sm:$0xff] %v768_v1 }
 0x317   : > { %777 = vst [vmem:[%s1571_s11 + $0x38] sm:$0xff] %v769_v2 }
 0x318   : > { %1071 = shalt.err (!%p1068_p3)
}
 0x319   : > { %s1072_s14 = scalar_lea.hbm %s1579_s26, 1024  ;;  %s1076_s12 = scalar_lea.hbm %s1638_s5, 2048 }
 0x31a   : > { %p1073_p5 = scmp.ne.s32.totalorder %s1579_s26, %s1072_s14  ;;  %p1077_p9 = scmp.lt.u32.totalorder %s1579_s26, %s1638_s5 }
 0x31b   : > { %p1078_p0 = scmp.lt.u32.totalorder %s1076_s12, %s1072_s14  ;;  %p1080_p6 = scmp.lt.u32.totalorder %s1072_s14, %s1579_s26 }
 0x31c   : > { %p1074_p7 = pnand %p1073_p5, %p1646_p11 }
 0x31d   : > { %p1079_p2 = por %p1078_p0, %p1077_p9 }
 0x31e   : > { %p1075_p8 = pneg %p1074_p7 }
 0x31f   : > { %p1081_p12 = por %p1080_p6, %p1079_p2 }
 0x321   : > { %p1082_p13 = pnand %p1081_p12, %p1075_p8 }
 0x323   : > { %1085 = shalt.err (!%p1082_p13)
}
 0x324   : > { %s1135_s11 = smov 512   ;;  %s1136_s17 = smov 1024  }
 0x325   : > { %s1137_s23 = smov 32  }
 0x326   : > { %925 = dma.vmem_to_hbm [thread:$0]  (%p1646_p11), %s1582_s13, 1024, %s1579_s26, %s779_s22, %s1135_s11, %s1136_s17, %s1137_s23  }
 0x327 PF: > { %s807_s9 = sand.u32 1, %s1112_s18   ;;  %p1647_p4 = scmp.ne.s32.totalorder %s1643_s6, 0 }
 0x328   : > { %p1648_p10 = scmp.ge.s32.totalorder %s1124_s21, 2  ;;  %s808_s28 = scalar_lea.sflag [#allocation4], %s807_s9 }
 0x32a   : > { %p932_p1 = pnand %p1648_p10, %p1647_p4 }
 0x32c   : > { %1107 = dma.done.wait (!%p932_p1), %s808_s28, 1024  }
 0x32d   : > { %1109 = vsyncadd (!%p932_p1), %s808_s28, 4294966272  ;;  %p18_p3 = scmp.ge.s32.totalorder %s1193_s24, 4   ;;  %s1649_s18 = smov %s1116_s19 }
 0x32e   : > { %s1650_s19 = smov %s1120_s20  ;;  %s1651_s20 = smov %s1205_s27 }
 0x32f   : > { %s1652_s21 = smov %s1193_s24  ;;  %20 = sbr.rel (!%p18_p3) target bundleno = 5 (0x5), region = 85 }
 0x336   :  { %813 = vsyncpa [#allocation3], 1 }
 0x337   :  { %815 = vsyncpa [#allocation3 + $0x1], 1 }
 0x338   :  { %816 = vsyncpa [#allocation4], 1 }
 0x339   :  { %818 = vsyncpa [#allocation4 + $0x1], 1 }

</bundles_post_ra>
